<compile_context>
chip_gen: v7x
topology: tpu7x:2x2x1
jax: 0.10.0
libtpu: 0.0.40
codegen_flags: <defaults>
</compile_context>

<pallas_src>
import functools

import jax
import jax.numpy as jnp
from jax.experimental import pallas as pl
from jax.experimental.pallas import tpu as pltpu

_SUBLANE = 8          # TPU sublane granularity for the second-to-last block dim
_DEFAULT_TILE = 2048  # rows per grid step; in+out double-buffered ~= 0.75 MiB at these widths


def _round_up(x, m):
    return (x + m - 1) // m * m


def _cdn_kernel(num_layers, x_ref, *refs):
    """Fused bias-free MLP over one batch tile (weights + tile fully VMEM-resident).

    refs = (w0_ref, ..., w_{L-1}_ref, out_ref); each w_i is pre-transposed to (in_i, out_i)
    so every layer is a plain `h @ W` on the MXU.
    """
    w_refs = refs[:num_layers]
    out_ref = refs[num_layers]

    h = x_ref[...].astype(jnp.float32)
    for i in range(num_layers):
        w = w_refs[i][...]
        # MXU matmul; operands may be bf16 (v6e/v7x fast path), accumulation is f32.
        h = jnp.dot(h.astype(w.dtype), w, preferred_element_type=jnp.float32)
        if i < num_layers - 1:
            h = jnp.tanh(h)  # EUP transcendental, f32
    out_ref[...] = h.astype(out_ref.dtype)


def prepare_cdn_weights(weights, *, dtype=jnp.float32):
    """One-time weight prep: nn.Linear (out,in) layout -> (in,out), optional bf16 cast.

    Call once and reuse the result across forward calls so the transpose/cast is not
    re-emitted as XLA ops (extra HBM round-trips) on every call.
    """
    return [jnp.asarray(w).astype(dtype).T for w in weights]


def cdn_forward(features, prepared_weights, *, batch_tile=None):
    """Fused CDN forward pass as one pallas_call.

    features:          (batch, arch[0])
    prepared_weights:  list of (arch[i], arch[i+1]) arrays from prepare_cdn_weights().
    """
    num_layers = len(prepared_weights)
    batch, in_dim = features.shape
    assert prepared_weights[0].shape[0] == in_dim, "weight/feature dim mismatch"
    dims = [in_dim] + [w.shape[1] for w in prepared_weights]
    out_dim = dims[-1]

    # ---- batch tiling: big tiles amortize per-step overhead; even step count for 2-TC chips.
    if batch_tile is None:
        if batch <= _DEFAULT_TILE:
            batch_tile = _round_up(batch, _SUBLANE)
        else:
            n_tiles = pl.cdiv(batch, _DEFAULT_TILE)
            n_tiles = _round_up(n_tiles, 2)      # even grid -> balanced across 2 TCs (v7x)
            batch_tile = _round_up(pl.cdiv(batch, n_tiles), _SUBLANE)
    grid = (pl.cdiv(batch, batch_tile),)         # last tile may be partial (rows independent)

    # Input / output blocks keep their true (unpadded) last dims -> minimal HBM traffic.
    in_specs = [pl.BlockSpec((batch_tile, in_dim), lambda b: (b, 0))]
    for w in prepared_weights:
        # Full-array block, constant index_map -> weights stay VMEM-resident across steps.
        # TODO(synk): pipeline_mode=pl.Buffered(1) would drop the redundant second weight
        # buffer (minor VMEM saving) once that knob is plumbed for top-level pallas_call.
        in_specs.append(pl.BlockSpec(w.shape, lambda b: (0, 0)))
    out_spec = pl.BlockSpec((batch_tile, out_dim), lambda b: (b, 0))

    # Advisory cost estimate on TRUE (unpadded) dims.
    flops = 2 * batch * sum(dims[i] * dims[i + 1] for i in range(num_layers))
    transcendentals = batch * sum(dims[1:-1])
    bytes_accessed = (features.dtype.itemsize * batch * in_dim
                      + sum(w.size * w.dtype.itemsize for w in prepared_weights)
                      + 4 * batch * out_dim)

    return pl.pallas_call(
        functools.partial(_cdn_kernel, num_layers),
        out_shape=jax.ShapeDtypeStruct((batch, out_dim), jnp.float32),
        grid=grid,
        in_specs=in_specs,
        out_specs=out_spec,
        compiler_params=pltpu.CompilerParams(
            dimension_semantics=("parallel",)),   # batch axis shards across TCs (v7x)
        cost_estimate=pl.CostEstimate(
            flops=flops, transcendentals=transcendentals,
            bytes_accessed=bytes_accessed),
    )(features, *prepared_weights)


def cdn_forward_ref(features, weights):
    """Pure-JAX reference (mirrors the PyTorch forward exactly; weights in (out,in) layout)."""
    h = features
    for i, w in enumerate(weights):
        h = h @ w.T
        if i < len(weights) - 1:
            h = jnp.tanh(h)
    return h


if __name__ == "__main__":
    # arch = [32, 64, 64, 16] -> 3 bias-free Linear layers, tanh between them.
    arch = [32, 64, 64, 16]
    batch = 8

    key = jax.random.PRNGKey(0)
    k_x, *k_ws = jax.random.split(key, 1 + (len(arch) - 1))

    features = jax.random.normal(k_x, (batch, arch[0]), dtype=jnp.float32)
    # Deterministic init (PyTorch Linear uses uniform(-1/sqrt(in), 1/sqrt(in))), (out,in) layout.
    weights = [
        jax.random.uniform(
            k_ws[i], (arch[i + 1], arch[i]), dtype=jnp.float32,
            minval=-1.0 / float(arch[i]) ** 0.5, maxval=1.0 / float(arch[i]) ** 0.5,
        )
        for i in range(len(arch) - 1)
    ]

    # Weight prep (transpose) is done ONCE and reused across all forward calls.
    w_f32 = prepare_cdn_weights(weights)

    out = jax.block_until_ready(cdn_forward(features, w_f32))
    ref = cdn_forward_ref(features, weights)
    assert out.shape == (batch, arch[-1])
    assert jnp.allclose(out, ref, atol=1e-5, rtol=1e-5), "mismatch vs reference (small)"

    # Large, non-tile-aligned batch: multi-step grid (even # of steps for v7x TC balance),
    # partial last tile (trailing unspecified rows are computed on but never written back).
    big_batch = 5000
    feats_big = jax.random.normal(jax.random.PRNGKey(1), (big_batch, arch[0]),
                                  dtype=jnp.float32)
    out_big = jax.block_until_ready(cdn_forward(feats_big, w_f32))
    ref_big = cdn_forward_ref(feats_big, weights)
    assert out_big.shape == (big_batch, arch[-1])
    assert jnp.allclose(out_big, ref_big, atol=1e-5, rtol=1e-5), "mismatch vs reference (big)"

    # bf16 MXU-operand fast path (v6e/v7x): weights pre-cast once, f32 accumulation + tanh.
    w_bf16 = prepare_cdn_weights(weights, dtype=jnp.bfloat16)
    out_bf = jax.block_until_ready(cdn_forward(features, w_bf16))
    assert out_bf.shape == (batch, arch[-1])
    assert jnp.allclose(out_bf, ref, atol=5e-2, rtol=5e-2), "mismatch vs reference (bf16)"

    # TODO(synk): CDN.back (MSE loss + Adam step) is training logic, not part of forward.
    print("KERNEL_OK")
</pallas_src>

<mosaic_0001>
module attributes {stable_mosaic.version = 11 : i64} {
  func.func @_cdn_kernel(%arg0: i32, %arg1: memref<8x32xf32, #tpu.memory_space<vmem>>, %arg2: memref<32x64xf32, #tpu.memory_space<vmem>>, %arg3: memref<64x64xf32, #tpu.memory_space<vmem>>, %arg4: memref<64x16xf32, #tpu.memory_space<vmem>>, %arg5: memref<8x16xf32, #tpu.memory_space<vmem>>) attributes {dimension_semantics = [#tpu.dimension_semantics<parallel>], iteration_bounds = array<i64: 1>, scalar_prefetch = 0 : i64, scratch_operands = 0 : i64, tpu.core_type = #tpu.core_type<tc>, window_params = [{transform_indices = @transform_0, window_bounds = array<i64: 8, 32>}, {pipeline_mode = #tpu.pipeline_mode<synchronous>, transform_indices = @transform_1, window_bounds = array<i64: 32, 64>}, {pipeline_mode = #tpu.pipeline_mode<synchronous>, transform_indices = @transform_2, window_bounds = array<i64: 64, 64>}, {pipeline_mode = #tpu.pipeline_mode<synchronous>, transform_indices = @transform_3, window_bounds = array<i64: 64, 16>}, {transform_indices = @transform_4, window_bounds = array<i64: 8, 16>}]} {
    %c0 = arith.constant 0 : index
    %c0_0 = arith.constant 0 : index
    %0 = vector.load %arg1[%c0, %c0_0] : memref<8x32xf32, #tpu.memory_space<vmem>>, vector<8x32xf32>
    %c0_1 = arith.constant 0 : index
    %c0_2 = arith.constant 0 : index
    %1 = vector.load %arg2[%c0_1, %c0_2] : memref<32x64xf32, #tpu.memory_space<vmem>>, vector<32x64xf32>
    %cst = arith.constant dense<0.000000e+00> : vector<8x64xf32>
    %2 = tpu.matmul %0, %1, %cst {dimension_numbers = #tpu.dot_dimension_numbers<[1], [0], [0], [1], [0, 0, 1, 1], [], []>} : vector<8x32xf32>, vector<32x64xf32>, vector<8x64xf32> -> vector<8x64xf32>
    %3 = math.tanh %2 : vector<8x64xf32>
    %c0_3 = arith.constant 0 : index
    %c0_4 = arith.constant 0 : index
    %4 = vector.load %arg3[%c0_3, %c0_4] : memref<64x64xf32, #tpu.memory_space<vmem>>, vector<64x64xf32>
    %cst_5 = arith.constant dense<0.000000e+00> : vector<8x64xf32>
    %5 = tpu.matmul %3, %4, %cst_5 {dimension_numbers = #tpu.dot_dimension_numbers<[1], [0], [0], [1], [0, 0, 1, 1], [], []>} : vector<8x64xf32>, vector<64x64xf32>, vector<8x64xf32> -> vector<8x64xf32>
    %6 = math.tanh %5 : vector<8x64xf32>
    %c0_6 = arith.constant 0 : index
    %c0_7 = arith.constant 0 : index
    %7 = vector.load %arg4[%c0_6, %c0_7] : memref<64x16xf32, #tpu.memory_space<vmem>>, vector<64x16xf32>
    %cst_8 = arith.constant dense<0.000000e+00> : vector<8x16xf32>
    %8 = tpu.matmul %6, %7, %cst_8 {dimension_numbers = #tpu.dot_dimension_numbers<[1], [0], [0], [1], [0, 0, 1, 1], [], []>} : vector<8x64xf32>, vector<64x16xf32>, vector<8x16xf32> -> vector<8x16xf32>
    %c0_9 = arith.constant 0 : index
    %c0_10 = arith.constant 0 : index
    %9 = vector.load %arg5[%c0_9, %c0_10] : memref<8x16xf32, #tpu.memory_space<vmem>>, vector<8x16xf32>
    tpu.vector_store %arg5[%c0_9, %c0_10], %8 {strides = array<i32>} : memref<8x16xf32, #tpu.memory_space<vmem>>, vector<8x16xf32>,
    return
  }
  func.func @transform_0(%arg0: i32) -> (i32, i32) {
    %c0_i32 = arith.constant 0 : i32
    %c0_i32_0 = arith.constant 0 : i32
    return %arg0, %c0_i32 : i32, i32
  }
  func.func @transform_1(%arg0: i32) -> (i32, i32) {
    %c0_i32 = arith.constant 0 : i32
    %c0_i32_0 = arith.constant 0 : i32
    %c0_i32_1 = arith.constant 0 : i32
    return %c0_i32, %c0_i32_0 : i32, i32
  }
  func.func @transform_2(%arg0: i32) -> (i32, i32) {
    %c0_i32 = arith.constant 0 : i32
    %c0_i32_0 = arith.constant 0 : i32
    %c0_i32_1 = arith.constant 0 : i32
    return %c0_i32, %c0_i32_0 : i32, i32
  }
  func.func @transform_3(%arg0: i32) -> (i32, i32) {
    %c0_i32 = arith.constant 0 : i32
    %c0_i32_0 = arith.constant 0 : i32
    %c0_i32_1 = arith.constant 0 : i32
    return %c0_i32, %c0_i32_0 : i32, i32
  }
  func.func @transform_4(%arg0: i32) -> (i32, i32) {
    %c0_i32 = arith.constant 0 : i32
    %c0_i32_0 = arith.constant 0 : i32
    return %arg0, %c0_i32 : i32, i32
  }
}

</mosaic_0001>

<bundles_post_ra>
// kernel: tpu_custom_call.1
= control target key start
LH: loop header
LB: loop body
LE: loop exit
PB: predicated region body
PF: predicated region fallthrough
CT: control target
= control target key end

     0   :  { %9 = vsyncpa [#allocation3], 0  ;;  %s579_s0 = inlined_call_operand.vmem [shape: f32[8,32], index: 0, kind: input, shape index: {}]   ;;  %s580_s1 = inlined_call_operand.hbm [shape: f32[32,64], index: 1, kind: input, shape index: {}]   ;;  %s581_s2 = inlined_call_operand.vmem [shape: f32[64,64], index: 2, kind: input, shape index: {}]   ;;  %s582_s3 = inlined_call_operand.vmem [shape: f32[64,16], index: 3, kind: input, shape index: {}]   ;;  %s583_s4 = inlined_call_operand.hbm [shape: f32[8,16], index: 4, kind: output, shape index: {}]  }
   0x1   :  { %10 = vsyncpa [#allocation4], 0  ;;  %s457_s15 = smov [#allocation2]   ;;  %s409_s19 = scalar_lea.hbm %s580_s1, 512 }
   0x2   :  { %s18_s16 = sshll.u32 %s457_s15, 4  ;;  %p410_p0 = scmp.ne.s32.totalorder %s580_s1, %s409_s19  ;;  %s19_s16 = int_to_ptr.vmem [resolvable:$true] %s18_s16 }
   0x3   :  { %p413_p1 = scmp.lt.u32.totalorder %s409_s19, %s580_s1 }
   0x5   :  { %p415_p2 = pnand %p413_p1, %p410_p0 }
   0x7   :  { %418 = shalt.err (!%p415_p2)
}
   0x8   :  { %s419_s24 = scalar_lea.vmem %s19_s16, 512  ;;  %p424_p4 = scmp.lt.s32.totalorder %s19_s16, %s19_s16 }
   0x9   :  { %p420_p3 = scmp.ne.s32.totalorder %s19_s16, %s419_s24  ;;  %p425_p5 = scmp.lt.s32.totalorder %s419_s24, %s419_s24 }
   0xb   :  { %p426_p6 = por %p425_p5, %p424_p4 }
   0xd   :  { %p427_p7 = pnand %p426_p6, %p420_p3 }
   0xf   :  { %430 = shalt.err (!%p427_p7)
}
  0x10   :  { %s458_s25 = smov 128   ;;  %s459_s26 = smov 8  }
  0x11   :  { %24 = dma.hbm_to_vmem [thread:$0]  %s580_s1, 512, %s19_s16, [#allocation3], %s458_s25, %s458_s25, %s459_s26  }
  0x12   :  { %453 = dma.done.wait [#allocation3], 512  }
  0x13   :  { %454 = vsyncadd [#allocation3], 4294966784  ;;  %v460_v0 = vmov 0.0|0.0   ;;  %vm461_vm0 = vmmov 0   ;;  %v462_v1 = vmov 0.0   ;;  %v33_v2 = vld [vmem:[#allocation2] sm:$0xff] }
  0x14   :  { %368 = vmatprep.subr.bf16.mxu0 %v460_v0  ;;  %327 = vmatprep.mubr.msk.f32.mxu0 %vm461_vm0, %v462_v1  ;;  %v34_v3 = vld [vmem:[#allocation2 + $0x8] sm:$0xff]  ;;  %v35_v4 = vld [vmem:[#allocation2 + $0x10] sm:$0xff]  ;;  %v36_v6 = vld [vmem:[#allocation2 + $0x18] sm:$0xff]  ;;  %vm37_vm1 = vcmask 261120   ;;  %vm120_vm2 = vcmask 523264   ;;  %s463_s7 = smov [#allocation5]  }
  0x15   :  { %374 = vmatprep.subr.bf16.mxu1 %v460_v0  ;;  %346 = vmatprep.mubr.msk.f32.mxu1 %vm461_vm0, %v462_v1  ;;  %v369_v5 = vpack.c.bf16 %v34_v3, %v33_v2  ;;  %v112_v7 = vld [vmem:[%s581_s2] sm:$0xff]  ;;  %v113_v8 = vld [vmem:[%s581_s2 + $0x8] sm:$0xff]  ;;  %v372_v9 = vpack.c.bf16 %v36_v6, %v35_v4  ;;  %v114_v12 = vld [vmem:[%s581_s2 + $0x10] sm:$0xff]  ;;  %s284_s8 = sshll.u32 %s463_s7, 4  ;;  %vm276_vm3 = vcmask 130048   ;;  %s285_s8 = int_to_ptr.vmem [resolvable:$true] %s284_s8 }
  0x16   :  { %v375_v10 = vpack.c.bf16 %v113_v8, %v112_v7  ;;  %v32_v11 = vld [vmem:[%s579_s0] sm:$0xff]  ;;  %v115_v13 = vld [vmem:[%s581_s2 + $0x18] sm:$0xff]  ;;  %v117_v16 = vld [vmem:[%s581_s2 + $0x28] sm:$0xff]  ;;  %s431_s9 = scalar_lea.vmem %s285_s8, 128  ;;  %p436_p9 = scmp.lt.s32.totalorder %s285_s8, %s285_s8 }
  0x17   :  { %370 = vmatpush3.bf16.msra.mxu0 %v369_v5  ;;  %v378_v14 = vpack.c.bf16 %v115_v13, %v114_v12  ;;  %v116_v15 = vld [vmem:[%s581_s2 + $0x20] sm:$0xff]  ;;  %v118_v18 = vld [vmem:[%s581_s2 + $0x30] sm:$0xff]  ;;  %v119_v19 = vld [vmem:[%s581_s2 + $0x38] sm:$0xff]  ;;  %p432_p8 = scmp.ne.s32.totalorder %s285_s8, %s431_s9  ;;  %p437_p10 = scmp.lt.s32.totalorder %s431_s9, %s431_s9 }
  0x18   :  { %371 = vmatprep.subr.bf16.mxu0 %v460_v0  ;;  %376 = vmatpush3.bf16.msra.mxu1 %v375_v10  ;;  %v381_v17 = vpack.c.bf16 %v117_v16, %v116_v15  ;;  %v384_v20 = vpack.c.bf16 %v119_v19, %v118_v18  ;;  %v195_v21 = vld [vmem:[%s582_s3] sm:$0xff]  ;;  %v196_v22 = vld [vmem:[%s582_s3 + $0x8] sm:$0xff]  ;;  %v197_v27 = vld [vmem:[%s582_s3 + $0x10] sm:$0xff] }
  0x19   :  { %377 = vmatprep.subr.bf16.mxu1 %v460_v0  ;;  %v387_v23 = vpack.c.bf16 %v196_v22, %v195_v21  ;;  %v198_v28 = vld [vmem:[%s582_s3 + $0x18] sm:$0xff]  ;;  %v199_v30 = vld [vmem:[%s582_s3 + $0x20] sm:$0xff]  ;;  %v200_v31 = vld [vmem:[%s582_s3 + $0x28] sm:$0xff]  ;;  %p438_p11 = por %p437_p10, %p436_p9 }
  0x1a   :  { %v390_v29 = vpack.c.bf16 %v198_v28, %v197_v27  ;;  %v393_v32 = vpack.c.bf16 %v200_v31, %v199_v30  ;;  %v201_v33 = vld [vmem:[%s582_s3 + $0x30] sm:$0xff]  ;;  %v202_v34 = vld [vmem:[%s582_s3 + $0x38] sm:$0xff] }
  0x1b   :  { %373 = vmatpush3.bf16.msra.mxu0 %v372_v9  ;;  %v396_v35 = vpack.c.bf16 %v202_v34, %v201_v33  ;;  %p439_p12 = pnand %p438_p11, %p432_p8 }
  0x1c   :  { %386 = vmatprep.subr.bf16.mxu0 %v460_v0  ;;  %379 = vmatpush3.bf16.msra.mxu1 %v378_v14 }
  0x1d   :  { %380 = vmatprep.subr.bf16.mxu1 %v460_v0 }
  0x1e   :  { %328 = vmatmul.mubr.msk.f32.vlgmr.msra.gmra.mrb[0].mxu0 %vm37_vm1, %v32_v11 }
  0x1f   :  { %365 = vmatprep.mubr.msk.f32.mxu0 %vm461_vm0, %v462_v1  ;;  %388 = vmatpush3.bf16.msra.mxu0 %v387_v23 }
  0x20   :  { %382 = vmatpush3.bf16.msra.mxu1 %v381_v17  ;;  %389 = vmatprep.subr.bf16.mxu0 %v460_v0 }
  0x21   :  { %383 = vmatprep.subr.bf16.mxu1 %v460_v0 }
  0x23   :  { %391 = vmatpush3.bf16.msra.mxu0 %v390_v29 }
  0x24   :  { %385 = vmatpush3.bf16.msra.mxu1 %v384_v20  ;;  %392 = vmatprep.subr.bf16.mxu0 %v460_v0 }
  0x27   :  { %394 = vmatpush3.bf16.msra.mxu0 %v393_v32 }
  0x28   :  { %395 = vmatprep.subr.bf16.mxu0 %v460_v0 }
  0x2b   :  { %397 = vmatpush3.bf16.msra.mxu0 %v396_v35 }
  0xf1   :  { %v107_v24 = vpop.f32.mrb[0].mxu0 }
  0xf2   :  { %405 = vtanh.f32 %v107_v24  ;;  %v329_v25 = vpop.f32.mrb[1].mxu0 }
  0xfc   :  { %v406_v26 = vpop.eup %405 }
  0xfd   :  { %347 = vmatmul.mubr.msk.f32.vlgmr.msra.gmra.mrb[0].mxu1 %vm120_vm2, %v406_v26 }
 0x1d0   :  { %v190_v36 = vpop.f32.mrb[0].mxu1 }
 0x1d1   :  { %407 = vtanh.f32 %v190_v36  ;;  %v348_v37 = vpop.f32.mrb[1].mxu1 }
 0x1db   :  { %v408_v38 = vpop.eup %407 }
 0x1dc   :  { %366 = vmatmul.mubr.msk.f32.vlgmr.msra.gmra.mrb[2].mxu0 %vm120_vm2, %v408_v38 }
 0x2af   :  { %v272_v39 = vpop.f32.mrb[2].mxu0 }
 0x2b0   :  { %v367_v40 = vpop.f32.mrb[3].mxu0  ;;  %277 = vst.msk [vmem:[#allocation5] sm:$0xff] %vm276_vm3, %v272_v39 }
 0x2b1   :  { %442 = shalt.err (!%p439_p12)
}
 0x2b2   :  { %s443_s11 = scalar_lea.hbm %s583_s4, 128 }
 0x2b3   :  { %p444_p13 = scmp.ne.s32.totalorder %s583_s4, %s443_s11  ;;  %p447_p0 = scmp.lt.u32.totalorder %s443_s11, %s583_s4 }
 0x2b5   :  { %p449_p1 = pnand %p447_p0, %p444_p13 }
 0x2b7   :  { %452 = shalt.err (!%p449_p1)
}
 0x2b8   :  { %287 = dma.vmem_to_hbm [thread:$0]  %s285_s8, 128, %s583_s4, [#allocation4]  }
 0x2b9   :  { %455 = dma.done.wait [#allocation4], 128  }
 0x2ba   :  { %456 = vsyncadd [#allocation4], 4294967168 }
 0x2bb   :  { %291 = vsyncpa [#allocation3], 1 }
 0x2bc   :  { %292 = vsyncpa [#allocation4], 1 }

</bundles_post_ra>
